<compile_context>
chip_gen: v5e
topology: v5e:2x2
jax: 0.10.0
libtpu: 0.0.40
codegen_flags: <defaults>
</compile_context>

<pallas_src>
import jax
import jax.numpy as jnp
from jax.experimental import pallas as pl
from jax.experimental.pallas import tpu as pltpu


_LANE = 128
_SUBLANE = 8
_TARGET_BLOCK_BYTES = 6 << 20   # ~6 MiB output block (double-buffered -> fits v7x)
_VMEM_LIMIT_BYTES = 48 << 20    # safe on v5e/v6e (128 MiB) and v7x (64 MiB physical)


def _choose_tb(batch, row_bytes):
    """Batch-tile size: large enough to amortize per-step overhead, small enough
    that the double-buffered blocks fit VMEM on every TPU generation."""
    tb = max(1, _TARGET_BLOCK_BYTES // max(1, row_bytes))
    tb = min(tb, batch)
    if tb >= _SUBLANE:
        tb = (tb // _SUBLANE) * _SUBLANE   # keep sublane-aligned tiles when possible
    return tb


def _embed_kernel(x_ref, w_ref, b_ref, o_ref):
    # Pure broadcasted FMA on the VPU.
    #   dense path: x (TB, N, 1) * w (N, D) + b (N, D) -> o (TB, N, D)
    #   flat  path: x (TB, L)    * w (1, L) + b (1, L) -> o (TB, L)
    o_ref[...] = x_ref[...] * w_ref[...] + b_ref[...]


def _embed_dense(x, weights, biases):
    """Direct 3-D layout; used when D is a multiple of 128 (already lane-dense)."""
    B, N = x.shape
    _, D = weights.shape
    dtype = x.dtype
    itemsize = jnp.dtype(dtype).itemsize

    # (B, N, 1): N -> sublanes, trailing 1 -> lanes; broadcast along D is a cheap
    # lane broadcast, no XLU transpose inside the kernel.
    x3 = x[..., None]

    TB = _choose_tb(B, N * D * itemsize)
    grid = (pl.cdiv(B, TB),)

    return pl.pallas_call(
        _embed_kernel,
        out_shape=jax.ShapeDtypeStruct((B, N, D), dtype),
        grid_spec=pltpu.PrefetchScalarGridSpec(
            num_scalar_prefetch=0,
            grid=grid,
            in_specs=[
                pl.BlockSpec((TB, N, 1), lambda i: (i, 0, 0)),  # batch tile of x
                pl.BlockSpec((N, D), lambda i: (0, 0)),         # weights (resident)
                pl.BlockSpec((N, D), lambda i: (0, 0)),         # biases  (resident)
            ],
            out_specs=pl.BlockSpec((TB, N, D), lambda i: (i, 0, 0)),
        ),
        compiler_params=pltpu.CompilerParams(
            dimension_semantics=("parallel",),
            vmem_limit_bytes=_VMEM_LIMIT_BYTES,
        ),
        cost_estimate=pl.CostEstimate(
            flops=2 * B * N * D,
            transcendentals=0,
            bytes_accessed=(B * N + 2 * N * D + B * N * D) * itemsize,
        ),
    )(x3, weights, biases)


def _embed_flat(x, weights, biases):
    """Flattened 2-D layout; used when D < 128 (or not a multiple of 128) so that
    output stores are lane-dense over N*D instead of masked over D lanes."""
    B, N = x.shape
    _, D = weights.shape
    dtype = x.dtype
    itemsize = jnp.dtype(dtype).itemsize
    L = N * D

    # Pre-broadcast x along D in the wrapper: extra x_rep traffic ~ output write,
    # still a clear win over 25%-lane masked vst stores on the store-slot path.
    x_rep = jnp.repeat(x, D, axis=1)          # (B, L), x_rep[b, n*D + d] = x[b, n]
    w_flat = weights.reshape(1, L)
    b_flat = biases.reshape(1, L)

    TB = _choose_tb(B, L * itemsize)
    grid = (pl.cdiv(B, TB),)

    out_flat = pl.pallas_call(
        _embed_kernel,
        out_shape=jax.ShapeDtypeStruct((B, L), dtype),
        grid_spec=pltpu.PrefetchScalarGridSpec(
            num_scalar_prefetch=0,
            grid=grid,
            in_specs=[
                pl.BlockSpec((TB, L), lambda i: (i, 0)),  # batch tile of x_rep
                pl.BlockSpec((1, L), lambda i: (0, 0)),   # weights (resident)
                pl.BlockSpec((1, L), lambda i: (0, 0)),   # biases  (resident)
            ],
            out_specs=pl.BlockSpec((TB, L), lambda i: (i, 0)),
        ),
        compiler_params=pltpu.CompilerParams(
            dimension_semantics=("parallel",),
            vmem_limit_bytes=_VMEM_LIMIT_BYTES,
        ),
        cost_estimate=pl.CostEstimate(
            flops=2 * B * L,
            transcendentals=0,
            bytes_accessed=(2 * B * L + 2 * L) * itemsize,
        ),
    )(x_rep, w_flat, b_flat)
    return out_flat.reshape(B, N, D)


def numerical_embedder(x, weights, biases):
    """x: (B, N); weights, biases: (N, D) -> (B, N, D) == x[..., None]*W + b."""
    B, N = x.shape
    N_w, D = weights.shape
    assert N == N_w and biases.shape == (N, D)
    # TODO(synk): for a bf16 downstream, set out dtype to bf16 to halve the
    # dominant HBM write traffic (kept f32 here to match the PyTorch module).
    if D % _LANE == 0:
        return _embed_dense(x, weights, biases)
    return _embed_flat(x, weights, biases)


def numerical_embedder_ref(x, weights, biases):
    return x[..., None] * weights + biases


if __name__ == "__main__":
    key = jax.random.PRNGKey(0)
    kx, kw, kb, kx2, kw2, kb2 = jax.random.split(key, 6)

    # Path 1: D < 128 -> lane-dense flattened kernel (batch=2, n=8, dim=32).
    B, N, D = 2, 8, 32
    x = jax.random.normal(kx, (B, N), dtype=jnp.float32)
    weights = jax.random.normal(kw, (N, D), dtype=jnp.float32)   # ~ torch.randn
    biases = jax.random.normal(kb, (N, D), dtype=jnp.float32)    # ~ torch.randn

    out = jax.block_until_ready(numerical_embedder(x, weights, biases))
    ref = numerical_embedder_ref(x, weights, biases)
    assert out.shape == (B, N, D)
    assert jnp.allclose(out, ref, atol=1e-6, rtol=1e-6)

    # Path 2: D a multiple of 128 -> direct 3-D lane-dense kernel.
    B2, N2, D2 = 5, 8, 128
    x2 = jax.random.normal(kx2, (B2, N2), dtype=jnp.float32)
    w2 = jax.random.normal(kw2, (N2, D2), dtype=jnp.float32)
    b2 = jax.random.normal(kb2, (N2, D2), dtype=jnp.float32)

    out2 = jax.block_until_ready(numerical_embedder(x2, w2, b2))
    ref2 = numerical_embedder_ref(x2, w2, b2)
    assert out2.shape == (B2, N2, D2)
    assert jnp.allclose(out2, ref2, atol=1e-6, rtol=1e-6)

    print("KERNEL_OK")
</pallas_src>

<mosaic_0001>
module attributes {stable_mosaic.version = 11 : i64} {
  func.func @_embed_kernel(%arg0: i32, %arg1: memref<2x256xf32, #tpu.memory_space<vmem>>, %arg2: memref<1x256xf32, #tpu.memory_space<vmem>>, %arg3: memref<1x256xf32, #tpu.memory_space<vmem>>, %arg4: memref<2x256xf32, #tpu.memory_space<vmem>>) attributes {dimension_semantics = [#tpu.dimension_semantics<parallel>], iteration_bounds = array<i64: 1>, scalar_prefetch = 0 : i64, scratch_operands = 0 : i64, tpu.core_type = #tpu.core_type<tc>, window_params = [{transform_indices = @transform_0, window_bounds = array<i64: 2, 256>}, {pipeline_mode = #tpu.pipeline_mode<synchronous>, transform_indices = @transform_1, window_bounds = array<i64: 1, 256>}, {pipeline_mode = #tpu.pipeline_mode<synchronous>, transform_indices = @transform_2, window_bounds = array<i64: 1, 256>}, {transform_indices = @transform_3, window_bounds = array<i64: 2, 256>}]} {
    %c0 = arith.constant 0 : index
    %c0_0 = arith.constant 0 : index
    %0 = vector.load %arg1[%c0, %c0_0] : memref<2x256xf32, #tpu.memory_space<vmem>>, vector<2x256xf32>
    %c0_1 = arith.constant 0 : index
    %c0_2 = arith.constant 0 : index
    %1 = vector.load %arg2[%c0_1, %c0_2] : memref<1x256xf32, #tpu.memory_space<vmem>>, vector<1x256xf32>
    %2 = vector.broadcast %1 : vector<1x256xf32> to vector<2x256xf32>
    %3 = arith.mulf %0, %2 : vector<2x256xf32>
    %c0_3 = arith.constant 0 : index
    %c0_4 = arith.constant 0 : index
    %4 = vector.load %arg3[%c0_3, %c0_4] : memref<1x256xf32, #tpu.memory_space<vmem>>, vector<1x256xf32>
    %5 = vector.broadcast %4 : vector<1x256xf32> to vector<2x256xf32>
    %6 = arith.addf %3, %5 : vector<2x256xf32>
    %c0_5 = arith.constant 0 : index
    %c0_6 = arith.constant 0 : index
    %7 = vector.load %arg4[%c0_5, %c0_6] : memref<2x256xf32, #tpu.memory_space<vmem>>, vector<2x256xf32>
    tpu.vector_store %arg4[%c0_5, %c0_6], %6 {strides = array<i32>} : memref<2x256xf32, #tpu.memory_space<vmem>>, vector<2x256xf32>,
    return
  }
  func.func @transform_0(%arg0: i32) -> (i32, i32) {
    %c0_i32 = arith.constant 0 : i32
    %c0_i32_0 = arith.constant 0 : i32
    return %arg0, %c0_i32 : i32, i32
  }
  func.func @transform_1(%arg0: i32) -> (i32, i32) {
    %c0_i32 = arith.constant 0 : i32
    %c0_i32_0 = arith.constant 0 : i32
    %c0_i32_1 = arith.constant 0 : i32
    return %c0_i32, %c0_i32_0 : i32, i32
  }
  func.func @transform_2(%arg0: i32) -> (i32, i32) {
    %c0_i32 = arith.constant 0 : i32
    %c0_i32_0 = arith.constant 0 : i32
    %c0_i32_1 = arith.constant 0 : i32
    return %c0_i32, %c0_i32_0 : i32, i32
  }
  func.func @transform_3(%arg0: i32) -> (i32, i32) {
    %c0_i32 = arith.constant 0 : i32
    %c0_i32_0 = arith.constant 0 : i32
    return %arg0, %c0_i32 : i32, i32
  }
}

</mosaic_0001>

<bundles_post_ra>
// kernel: tpu_custom_call.1
= control target key start
LH: loop header
LB: loop body
LE: loop exit
PB: predicated region body
PF: predicated region fallthrough
CT: control target
= control target key end

     0   :  { %8 = vsyncpa [#allocation3], 0  ;;  %s235_s0 = inlined_call_operand.hbm [shape: f32[2,256], index: 0, kind: input, shape index: {}]   ;;  %s236_s1 = inlined_call_operand.hbm [shape: f32[1,256], index: 1, kind: input, shape index: {}]   ;;  %s237_s2 = inlined_call_operand.hbm [shape: f32[1,256], index: 2, kind: input, shape index: {}]   ;;  %s238_s3 = inlined_call_operand.hbm [shape: f32[2,256], index: 3, kind: output, shape index: {}]  }
   0x1   :  { %9 = vsyncpa [#allocation6], 0  ;;  %s27_s14 = sshll.u32 %s236_s1, 4  ;;  %s28_s14 = int_to_ptr.hbm [resolvable:$true] %s27_s14 }
   0x2   :  { %10 = vsyncpa [#allocation4], 0  ;;  %s199_s15 = smov [#allocation5]   ;;  %s16_s19 = sshll.u32 %s235_s0, 4  ;;  %s17_s19 = int_to_ptr.hbm [resolvable:$true] %s16_s19 }
   0x3   :  { %s29_s16 = sshll.u32 %s199_s15, 4  ;;  %s200_s20 = smov [#allocation2]   ;;  %s30_s16 = int_to_ptr.vmem [resolvable:$true] %s29_s16 }
   0x4   :  { %32 = dma.hbm_to_vmem [thread:$0]  %s28_s14, 32, %s30_s16, [#allocation6]  }
   0x5   :  { %s18_s21 = sshll.u32 %s200_s20, 4  ;;  %s38_s24 = sshll.u32 %s237_s2, 4  ;;  %s19_s21 = int_to_ptr.vmem [resolvable:$true] %s18_s21  ;;  %s39_s24 = int_to_ptr.hbm [resolvable:$true] %s38_s24 }
   0x6   :  { %21 = dma.hbm_to_vmem [thread:$0]  %s17_s19, 64, %s19_s21, [#allocation3]  }
   0x7   :  { %s201_s1 = smov [#allocation7]  }
   0x8   :  { %s40_s25 = sshll.u32 %s201_s1, 4  ;;  %s41_s25 = int_to_ptr.vmem [resolvable:$true] %s40_s25 }
   0x9   :  { %43 = dma.hbm_to_vmem [thread:$0]  %s39_s24, 32, %s41_s25, [#allocation6]  }
   0xa   :  { %193 = dma.done.wait [#allocation3], 64  }
   0xb   :  { %194 = vsyncadd [#allocation3], 4294967232 }
   0xc   :  { %195 = dma.done.wait [#allocation6], 64  }
   0xd   :  { %196 = vsyncadd [#allocation6], 4294967232  ;;  %v57_v0 = vld [vmem:[#allocation5] sm:$0x3]  ;;  %v66_v1 = vld [vmem:[#allocation7] sm:$0x3] }
   0xe   :  { %v59_v2 = vperm.slane %v57_v0, 0  ;;  %v60_v3 = vperm.slane %v57_v0, 1  ;;  %v68_v4 = vperm.slane %v66_v1, 0  ;;  %v69_v5 = vperm.slane %v66_v1, 1  ;;  %v56_v6 = vld [vmem:[#allocation2] sm:$0xf] }
   0xf   :  { %vm62_vm0 = vcmask 1041408   ;;  %s202_s0 = smov [#allocation8]   ;;  %s82_s28 = sshll.u32 %s238_s3, 4  ;;  %s83_s28 = int_to_ptr.hbm [resolvable:$true] %s82_s28 }
  0x10   :  { %v61_v7 = vrot.slane %v60_v3, 6  ;;  %v70_v8 = vrot.slane %v69_v5, 6  ;;  %s80_s2 = sshll.u32 %s202_s0, 4  ;;  %s81_s2 = int_to_ptr.vmem [resolvable:$true] %s80_s2 }
  0x12   :  { %v63_v9 = vsel %vm62_vm0, %v59_v2, %v61_v7  ;;  %v71_v10 = vsel %vm62_vm0, %v68_v4, %v70_v8 }
  0x13   :  { %v65_v11 = vmul.f32 %v63_v9, %v56_v6 }
  0x15   :  { %v73_v12 = vadd.f32 %v71_v10, %v65_v11 }
  0x17   :  { %74 = vst [vmem:[#allocation8] sm:$0xf] %v73_v12 }
  0x18   :  { %85 = dma.vmem_to_hbm [thread:$0]  %s81_s2, 64, %s83_s28, [#allocation4]  }
  0x19   :  { %197 = dma.done.wait [#allocation4], 64  }
  0x1a   :  { %198 = vsyncadd [#allocation4], 4294967232 }
  0x1b   :  { %90 = vsyncpa [#allocation3], 1 }
  0x1c   :  { %91 = vsyncpa [#allocation6], 1 }
  0x1d   :  { %92 = vsyncpa [#allocation4], 1 }

</bundles_post_ra>
